<compile_context>
chip_gen: v5e
topology: v5e:2x2
jax: 0.10.0
libtpu: 0.0.40
codegen_flags: <defaults>
</compile_context>

<pallas_src>
import jax
import jax.numpy as jnp
from jax.experimental import pallas as pl
from jax.experimental.pallas import tpu as pltpu


def _swish_kernel(x_ref, o_ref):
    x = x_ref[...]
    # Compute in f32 (no-op cast for f32 inputs; free filler under the DMA
    # roofline for sub-32-bit dtypes).
    xf = x.astype(jnp.float32)
    o_ref[...] = (jax.nn.sigmoid(xf) * xf).astype(o_ref.dtype)


def _swish_2d(x2d, tile_rows):
    rows, lanes = x2d.shape
    itemsize = jnp.dtype(x2d.dtype).itemsize
    block_bytes = tile_rows * lanes * itemsize
    # in + out, double-buffered, plus margin; clamp to a range that is safe on
    # v5e/v6e (128 MiB physical) and v7x (64 MiB physical, 32 MiB default).
    vmem_limit = min(max(4 * block_bytes + (1 << 20), 8 << 20), 32 << 20)

    return pl.pallas_call(
        _swish_kernel,
        out_shape=jax.ShapeDtypeStruct((rows, lanes), x2d.dtype),
        grid_spec=pltpu.PrefetchScalarGridSpec(
            num_scalar_prefetch=0,
            grid=(pl.cdiv(rows, tile_rows),),
            in_specs=[pl.BlockSpec((tile_rows, lanes), lambda i: (i, 0))],
            out_specs=pl.BlockSpec((tile_rows, lanes), lambda i: (i, 0)),
        ),
        compiler_params=pltpu.CompilerParams(
            dimension_semantics=("parallel",),
            vmem_limit_bytes=vmem_limit,
        ),
        # Elementwise, same shape/dtype: let the output reuse the input's HBM
        # buffer (no extra activation-sized allocation).
        input_output_aliases={0: 0},
    )(x2d)


@jax.jit
def swish(x):
    """Elementwise swish: sigmoid(x) * x, matching torch semantics."""
    orig_shape = x.shape
    total = int(x.size)
    if total == 0:
        return x

    flat = x.reshape(-1)

    # Pick the widest lane-dense width (multiple of 128) that divides the
    # element count; otherwise pad up to a multiple of 128.
    lanes = 0
    for cand in (2048, 1024, 512, 256, 128):
        if total % cand == 0:
            lanes = cand
            break
    if lanes == 0:
        lanes = 128
        pad = (-total) % lanes
        flat = jnp.pad(flat, (0, pad))
    padded_total = int(flat.size)
    rows = padded_total // lanes
    x2d = flat.reshape(rows, lanes)

    # Byte-budgeted tile: ~2 MiB per block buffer, rows a multiple of 8.
    itemsize = jnp.dtype(x.dtype).itemsize
    target_bytes = 2 << 20
    tile_rows = max(8, (target_bytes // (lanes * itemsize)) // 8 * 8)
    if tile_rows >= rows:
        tile_rows = rows  # single full-extent block (always a legal shape)

    out2d = _swish_2d(x2d, tile_rows)

    out_flat = out2d.reshape(-1)
    if padded_total != total:
        out_flat = out_flat[:total]
    return out_flat.reshape(orig_shape)


if __name__ == "__main__":
    key = jax.random.PRNGKey(0)
    # NCHW-style input, same convention as the PyTorch module would receive.
    x = jax.random.normal(key, (2, 4, 16, 16), dtype=jnp.float32)

    y = swish(x)
    jax.block_until_ready(y)

    # Reference check against plain JAX.
    y_ref = jax.nn.sigmoid(x) * x
    assert y.shape == x.shape and y.dtype == x.dtype
    assert jnp.allclose(y, y_ref, atol=1e-6, rtol=1e-6)

    print("KERNEL_OK")
</pallas_src>

<mosaic_0001>
module attributes {stable_mosaic.version = 11 : i64} {
  func.func @_swish_kernel(%arg0: i32, %arg1: memref<1x2048xf32, #tpu.memory_space<vmem>>, %arg2: memref<1x2048xf32, #tpu.memory_space<vmem>>) attributes {dimension_semantics = [#tpu.dimension_semantics<parallel>], iteration_bounds = array<i64: 1>, scalar_prefetch = 0 : i64, scratch_operands = 0 : i64, tpu.core_type = #tpu.core_type<tc>, window_params = [{transform_indices = @transform_0, window_bounds = array<i64: 1, 2048>}, {transform_indices = @transform_1, window_bounds = array<i64: 1, 2048>}]} {
    %c0 = arith.constant 0 : index
    %c0_0 = arith.constant 0 : index
    %0 = vector.load %arg1[%c0, %c0_0] : memref<1x2048xf32, #tpu.memory_space<vmem>>, vector<1x2048xf32>
    %1 = arith.negf %0 : vector<1x2048xf32>
    %2 = math.exp %1 : vector<1x2048xf32>
    %cst = arith.constant 1.000000e+00 : f32
    %3 = vector.broadcast %cst : f32 to vector<1x2048xf32>
    %4 = arith.addf %3, %2 : vector<1x2048xf32>
    %5 = arith.divf %3, %4 : vector<1x2048xf32>
    %6 = arith.mulf %5, %0 : vector<1x2048xf32>
    %c0_1 = arith.constant 0 : index
    %c0_2 = arith.constant 0 : index
    %7 = vector.load %arg2[%c0_1, %c0_2] : memref<1x2048xf32, #tpu.memory_space<vmem>>, vector<1x2048xf32>
    tpu.vector_store %arg2[%c0_1, %c0_2], %6 {strides = array<i32>} : memref<1x2048xf32, #tpu.memory_space<vmem>>, vector<1x2048xf32>,
    return
  }
  func.func @transform_0(%arg0: i32) -> (i32, i32) {
    %c0_i32 = arith.constant 0 : i32
    %c0_i32_0 = arith.constant 0 : i32
    return %arg0, %c0_i32 : i32, i32
  }
  func.func @transform_1(%arg0: i32) -> (i32, i32) {
    %c0_i32 = arith.constant 0 : i32
    %c0_i32_0 = arith.constant 0 : i32
    return %arg0, %c0_i32 : i32, i32
  }
}

</mosaic_0001>

<bundles_post_ra>
// kernel: swish.1
= control target key start
LH: loop header
LB: loop body
LE: loop exit
PB: predicated region body
PF: predicated region fallthrough
CT: control target
= control target key end

     0   :  { %s88_s0 = inlined_call_operand.vmem [shape: f32[1,2048], index: 0, kind: input, shape index: {}, may-alias: {0,1}]   ;;  %s89_s1 = inlined_call_operand.vmem [shape: f32[1,2048], index: 1, kind: output, shape index: {}, may-alias: {0,1}]  }
   0x1   :  { %v8_v0 = vld [vmem:[%s88_s0] sm:$0xff]  ;;  %v9_v1 = vld [vmem:[%s88_s0 + $0x8] sm:$0xff] }
   0x2   :  { %v56_v2 = vmul.f32 -1.442695, %v8_v0  ;;  %v57_v3 = vmul.f32 -1.442695, %v9_v1 }
   0x4   :  { %58 = vpow2.f32 %v56_v2 }
   0x5   :  { %60 = vpow2.f32 %v57_v3 }
   0xa   :  { %v59_v4 = vpop.eup %58 }
   0xb   :  { %v61_v5 = vpop.eup %60  ;;  %v16_v6 = vadd.f32 1.0, %v59_v4 }
   0xc   :  { %v17_v7 = vadd.f32 1.0, %v61_v5 }
   0xd   :  { %62 = vrcp.f32 %v16_v6  ;;  %vm23_vm0 = vweird.f32 %v16_v6  ;;  %v29_v11 = vand.u32 2147483648, %v16_v6  ;;  %v27_v14 = vand.u32 2147483647, %v16_v6 }
   0xe   :  { %64 = vrcp.f32 %v17_v7  ;;  %v44_v15 = vand.u32 2147483648, %v17_v7  ;;  %vm38_vm2 = vweird.f32 %v17_v7  ;;  %v42_v17 = vand.u32 2147483647, %v17_v7 }
   0xf   :  { %v30_v19 = vor.u32 1.1754944e-38, %v29_v11  ;;  %vm28_vm5 = vcmp.eq.f32.partialorder %v27_v14, 8.507059e+37 }
  0x10   :  { %v45_v22 = vor.u32 1.1754944e-38, %v44_v15  ;;  %vm43_vm7 = vcmp.eq.f32.partialorder %v42_v17, 8.507059e+37 }
  0x13   :  { %v63_v8 = vpop.eup %62 }
  0x14   :  { %v65_v9 = vpop.eup %64  ;;  %v19_v10 = vmul.f32 %v63_v8, %v16_v6  ;;  %vm24_vm1 = vweird.f32 %v63_v8 }
  0x15   :  { %v34_v12 = vmul.f32 %v65_v9, %v17_v7  ;;  %vm39_vm3 = vweird.f32 %v65_v9  ;;  %vm25_vm4 = vmor %vm23_vm0, %vm24_vm1 }
  0x16   :  { %v20_v13 = vsub.f32 1.0, %v19_v10  ;;  %vm40_vm6 = vmor %vm38_vm2, %vm39_vm3 }
  0x17   :  { %v35_v16 = vsub.f32 1.0, %v34_v12 }
  0x18   :  { %v21_v18 = vmul.f32 %v63_v8, %v20_v13 }
  0x19   :  { %v36_v20 = vmul.f32 %v65_v9, %v35_v16 }
  0x1a   :  { %v22_v21 = vadd.f32 %v63_v8, %v21_v18 }
  0x1b   :  { %v37_v23 = vadd.f32 %v65_v9, %v36_v20 }
  0x1c   :  { %v26_v24 = vsel %vm25_vm4, %v63_v8, %v22_v21 }
  0x1d   :  { %v31_v25 = vsel %vm28_vm5, %v30_v19, %v26_v24  ;;  %v41_v26 = vsel %vm40_vm6, %v65_v9, %v37_v23 }
  0x1e   :  { %v48_v27 = vmul.f32 %v31_v25, %v8_v0  ;;  %v46_v28 = vsel %vm43_vm7, %v45_v22, %v41_v26 }
  0x1f   :  { %v49_v29 = vmul.f32 %v46_v28, %v9_v1 }
  0x20   :  { %50 = vst [vmem:[%s89_s1] sm:$0xff] %v48_v27 }
  0x21   :  { %51 = vst [vmem:[%s89_s1 + $0x8] sm:$0xff] %v49_v29 }

</bundles_post_ra>
